<compile_context>
chip_gen: v7x
topology: tpu7x:2x2x1
jax: 0.10.0
libtpu: 0.0.40
codegen_flags: <defaults>
</compile_context>

<pallas_src>
import math
from dataclasses import dataclass

import jax
import jax.numpy as jnp
from jax.experimental import pallas as pl
from jax.experimental.pallas import tpu as pltpu

_TARGET_BLOCK_BYTES = 1 << 20  # ~1 MiB data blocks: >=85% of HBM roofline;
                               # 2 tensors * (in+out) * double-buffer ~= 8 MiB VMEM.


# ----------------------------- layout helpers ------------------------------

def _round_up(x: int, m: int) -> int:
    return ((x + m - 1) // m) * m


def _lane_factor(d: int) -> int:
    """Smallest k such that (k * d) % 128 == 0 (lane-dense feature axis)."""
    return 128 // math.gcd(d, 128)


def _natural_num_blocks(n: int, d: int, itemsize: int) -> int:
    """Row-block count of an (n, d) array after lane-densification."""
    k = _lane_factor(d)
    lane = k * d
    r = pl.cdiv(n, k)                                  # rows of densified slab
    br = (_TARGET_BLOCK_BYTES // (lane * itemsize)) // 8 * 8
    br = max(8, min(br, _round_up(r, 8)))
    return pl.cdiv(r, br)


def _densify_to_blocks(x, mean, inv_scale, num_blocks: int):
    """Reshape (n, d) -> (num_blocks * br, k*d), zero-padding extra rows.

    Densified element (j, a*d + f) is original element (j*k + a, f), so tiling
    mean/inv_scale k times along the lane axis preserves broadcast semantics.
    Returns (x2, mean2, inv2, block_rows, lane_width).
    """
    n, d = x.shape
    k = _lane_factor(d)
    lane = k * d
    r = pl.cdiv(n, k)
    br = max(8, _round_up(pl.cdiv(r, num_blocks), 8))
    r_pad = num_blocks * br
    n_pad = r_pad * k
    x_pad = jnp.pad(x, ((0, n_pad - n), (0, 0)))       # pad rows sliced off later
    x2 = x_pad.reshape(r_pad, lane)
    m2 = jnp.tile(mean.reshape(1, d).astype(x.dtype), (1, k))
    s2 = jnp.tile(inv_scale.reshape(1, d).astype(x.dtype), (1, k))
    return x2, m2, s2, br, lane


# ------------------------------ Pallas kernels ------------------------------

def _scale_kernel(x_ref, mean_ref, inv_ref, o_ref):
    # (br, L) - (1, L) broadcast; pure VPU work, strictly HBM-bandwidth bound.
    o_ref[...] = (x_ref[...] - mean_ref[...]) * inv_ref[...]


def _fused_scale_kernel(v_ref, vm_ref, vi_ref, e_ref, em_ref, ei_ref,
                        vo_ref, eo_ref):
    vo_ref[...] = (v_ref[...] - vm_ref[...]) * vi_ref[...]
    eo_ref[...] = (e_ref[...] - em_ref[...]) * ei_ref[...]


# ------------------------------ kernel wrappers ------------------------------

@jax.jit
def scale_apply(x, mean, inv_scale):
    """(x - mean) * inv_scale with (1, D) params broadcast over rows."""
    n, d = x.shape
    g = _natural_num_blocks(n, d, x.dtype.itemsize)
    x2, m2, s2, br, lane = _densify_to_blocks(x, mean, inv_scale, g)
    out = pl.pallas_call(
        _scale_kernel,
        out_shape=jax.ShapeDtypeStruct((g * br, lane), x.dtype),
        grid=(g,),
        in_specs=[
            pl.BlockSpec((br, lane), lambda i: (i, 0)),
            # constant index_map -> params fetched once, stay VMEM-resident
            pl.BlockSpec((1, lane), lambda i: (0, 0)),
            pl.BlockSpec((1, lane), lambda i: (0, 0)),
        ],
        out_specs=pl.BlockSpec((br, lane), lambda i: (i, 0)),
        compiler_params=pltpu.CompilerParams(
            dimension_semantics=("parallel",)),
    )(x2, m2, s2)
    return out.reshape(-1, d)[:n]


@jax.jit
def graph_scale_apply(V, v_mean, v_inv, E, e_mean, e_inv):
    """Fused (single pallas_call) scaling of node + edge feature matrices."""
    nv, dv = V.shape
    ne, de = E.shape
    # Shared grid: both tensors are padded to exactly `g` row blocks (each with
    # its own block height), so index maps stay the identity over the grid.
    g = max(_natural_num_blocks(nv, dv, V.dtype.itemsize),
            _natural_num_blocks(ne, de, E.dtype.itemsize))
    v2, vm2, vi2, brv, lv = _densify_to_blocks(V, v_mean, v_inv, g)
    e2, em2, ei2, bre, le = _densify_to_blocks(E, e_mean, e_inv, g)

    v_out, e_out = pl.pallas_call(
        _fused_scale_kernel,
        out_shape=(jax.ShapeDtypeStruct((g * brv, lv), V.dtype),
                   jax.ShapeDtypeStruct((g * bre, le), E.dtype)),
        grid=(g,),
        in_specs=[
            pl.BlockSpec((brv, lv), lambda i: (i, 0)),
            pl.BlockSpec((1, lv), lambda i: (0, 0)),
            pl.BlockSpec((1, lv), lambda i: (0, 0)),
            pl.BlockSpec((bre, le), lambda i: (i, 0)),
            pl.BlockSpec((1, le), lambda i: (0, 0)),
            pl.BlockSpec((1, le), lambda i: (0, 0)),
        ],
        out_specs=(pl.BlockSpec((brv, lv), lambda i: (i, 0)),
                   pl.BlockSpec((bre, le), lambda i: (i, 0))),
        compiler_params=pltpu.CompilerParams(
            dimension_semantics=("parallel",)),
    )(v2, vm2, vi2, e2, em2, ei2)
    return v_out.reshape(-1, dv)[:nv], e_out.reshape(-1, de)[:ne]


# ------------------------- Module-equivalent glue ----------------------------

class ScaleTransform:
    """JAX/Pallas equivalent of chemprop2 ScaleTransform (eval-mode forward)."""

    def __init__(self, mean, scale, pad: int = 0):
        mean = jnp.concatenate(
            [jnp.zeros((pad,), jnp.float32), jnp.asarray(mean, jnp.float32)])
        scale = jnp.concatenate(
            [jnp.ones((pad,), jnp.float32), jnp.asarray(scale, jnp.float32)])
        if mean.shape != scale.shape:
            raise ValueError(
                f"uneven shapes for 'mean' and 'scale'! got: mean={mean.shape}, "
                f"scale={scale.shape}")
        self.mean = mean[None, :]                     # (1, D)
        self.scale = scale[None, :]                   # (1, D)
        # Host-precomputed reciprocal: kernel does (x - mean) * inv_scale.
        # NOTE: zeros in `scale` yield inf/nan, same as the torch module.
        self.inv_scale = (1.0 / scale)[None, :]       # (1, D)
        self.training = False

    def __call__(self, X: jax.Array) -> jax.Array:
        if self.training:
            return X
        return scale_apply(X, self.mean, self.inv_scale)


@dataclass
class BatchMolGraph:
    V: jax.Array  # (num_atoms, d_v) node features
    E: jax.Array  # (num_bonds, d_e) edge features


class GraphTransform:
    def __init__(self, V_transform: ScaleTransform, E_transform: ScaleTransform):
        self.V_transform = V_transform
        self.E_transform = E_transform
        self.training = False

    def __call__(self, bmg: BatchMolGraph) -> BatchMolGraph:
        if self.training:
            return bmg
        # Single fused launch for both V and E (jitted wrapper + one pallas_call).
        bmg.V, bmg.E = graph_scale_apply(
            bmg.V, self.V_transform.mean, self.V_transform.inv_scale,
            bmg.E, self.E_transform.mean, self.E_transform.inv_scale)
        return bmg


# --------------------------------- Demo -------------------------------------

if __name__ == "__main__":
    key = jax.random.PRNGKey(0)
    k_v, k_e, k_vm, k_vs, k_em, k_es = jax.random.split(key, 6)

    # Small, chemprop-like shapes; row counts deliberately NOT multiples of 8
    # to exercise the padding path.
    num_atoms, d_v = 13, 8
    num_bonds, d_e_raw, e_pad = 22, 10, 2      # E feature dim = pad + raw = 12
    d_e = e_pad + d_e_raw

    V = jax.random.normal(k_v, (num_atoms, d_v), jnp.float32)
    E = jax.random.normal(k_e, (num_bonds, d_e), jnp.float32)

    # Deterministic synthetic scaler parameters.
    V_mean = jax.random.normal(k_vm, (d_v,), jnp.float32)
    V_scale = jax.random.uniform(k_vs, (d_v,), jnp.float32, 0.5, 2.0)
    E_mean = jax.random.normal(k_em, (d_e_raw,), jnp.float32)
    E_scale = jax.random.uniform(k_es, (d_e_raw,), jnp.float32, 0.5, 2.0)

    transform = GraphTransform(
        V_transform=ScaleTransform(V_mean, V_scale, pad=0),
        E_transform=ScaleTransform(E_mean, E_scale, pad=e_pad),
    )

    bmg = BatchMolGraph(V=V, E=E)
    out = transform(bmg)                       # fused V+E Pallas launch
    jax.block_until_ready(out.V)
    jax.block_until_ready(out.E)

    # Exercise the standalone single-tensor kernel path as well.
    V_single = transform.V_transform(V)
    jax.block_until_ready(V_single)

    # Plain-JAX reference check (true division, as in the PyTorch module).
    V_ref = (V - transform.V_transform.mean) / transform.V_transform.scale
    E_ref = (E - transform.E_transform.mean) / transform.E_transform.scale
    assert out.V.shape == V.shape and out.E.shape == E.shape
    assert jnp.allclose(out.V, V_ref, atol=1e-6, rtol=1e-6)
    assert jnp.allclose(out.E, E_ref, atol=1e-6, rtol=1e-6)
    assert jnp.allclose(V_single, V_ref, atol=1e-6, rtol=1e-6)

    print("KERNEL_OK")
</pallas_src>

<mosaic_0001>
module attributes {stable_mosaic.version = 11 : i64} {
  func.func @_fused_scale_kernel(%arg0: i32, %arg1: memref<8x128xf32, #tpu.memory_space<vmem>>, %arg2: memref<1x128xf32, #tpu.memory_space<vmem>>, %arg3: memref<1x128xf32, #tpu.memory_space<vmem>>, %arg4: memref<8x384xf32, #tpu.memory_space<vmem>>, %arg5: memref<1x384xf32, #tpu.memory_space<vmem>>, %arg6: memref<1x384xf32, #tpu.memory_space<vmem>>, %arg7: memref<8x128xf32, #tpu.memory_space<vmem>>, %arg8: memref<8x384xf32, #tpu.memory_space<vmem>>) attributes {dimension_semantics = [#tpu.dimension_semantics<parallel>], iteration_bounds = array<i64: 1>, scalar_prefetch = 0 : i64, scratch_operands = 0 : i64, tpu.core_type = #tpu.core_type<tc>, window_params = [{transform_indices = @transform_0, window_bounds = array<i64: 8, 128>}, {pipeline_mode = #tpu.pipeline_mode<synchronous>, transform_indices = @transform_1, window_bounds = array<i64: 1, 128>}, {pipeline_mode = #tpu.pipeline_mode<synchronous>, transform_indices = @transform_2, window_bounds = array<i64: 1, 128>}, {transform_indices = @transform_3, window_bounds = array<i64: 8, 384>}, {pipeline_mode = #tpu.pipeline_mode<synchronous>, transform_indices = @transform_4, window_bounds = array<i64: 1, 384>}, {pipeline_mode = #tpu.pipeline_mode<synchronous>, transform_indices = @transform_5, window_bounds = array<i64: 1, 384>}, {transform_indices = @transform_6, window_bounds = array<i64: 8, 128>}, {transform_indices = @transform_7, window_bounds = array<i64: 8, 384>}]} {
    %c0 = arith.constant 0 : index
    %c0_0 = arith.constant 0 : index
    %0 = vector.load %arg1[%c0, %c0_0] : memref<8x128xf32, #tpu.memory_space<vmem>>, vector<8x128xf32>
    %c0_1 = arith.constant 0 : index
    %c0_2 = arith.constant 0 : index
    %1 = vector.load %arg2[%c0_1, %c0_2] : memref<1x128xf32, #tpu.memory_space<vmem>>, vector<1x128xf32>
    %2 = vector.broadcast %1 : vector<1x128xf32> to vector<8x128xf32>
    %3 = arith.subf %0, %2 : vector<8x128xf32>
    %c0_3 = arith.constant 0 : index
    %c0_4 = arith.constant 0 : index
    %4 = vector.load %arg3[%c0_3, %c0_4] : memref<1x128xf32, #tpu.memory_space<vmem>>, vector<1x128xf32>
    %5 = vector.broadcast %4 : vector<1x128xf32> to vector<8x128xf32>
    %6 = arith.mulf %3, %5 : vector<8x128xf32>
    %c0_5 = arith.constant 0 : index
    %c0_6 = arith.constant 0 : index
    %7 = vector.load %arg7[%c0_5, %c0_6] : memref<8x128xf32, #tpu.memory_space<vmem>>, vector<8x128xf32>
    tpu.vector_store %arg7[%c0_5, %c0_6], %6 {strides = array<i32>} : memref<8x128xf32, #tpu.memory_space<vmem>>, vector<8x128xf32>,
    %c0_7 = arith.constant 0 : index
    %c0_8 = arith.constant 0 : index
    %8 = vector.load %arg4[%c0_7, %c0_8] : memref<8x384xf32, #tpu.memory_space<vmem>>, vector<8x384xf32>
    %c0_9 = arith.constant 0 : index
    %c0_10 = arith.constant 0 : index
    %9 = vector.load %arg5[%c0_9, %c0_10] : memref<1x384xf32, #tpu.memory_space<vmem>>, vector<1x384xf32>
    %10 = vector.broadcast %9 : vector<1x384xf32> to vector<8x384xf32>
    %11 = arith.subf %8, %10 : vector<8x384xf32>
    %c0_11 = arith.constant 0 : index
    %c0_12 = arith.constant 0 : index
    %12 = vector.load %arg6[%c0_11, %c0_12] : memref<1x384xf32, #tpu.memory_space<vmem>>, vector<1x384xf32>
    %13 = vector.broadcast %12 : vector<1x384xf32> to vector<8x384xf32>
    %14 = arith.mulf %11, %13 : vector<8x384xf32>
    %c0_13 = arith.constant 0 : index
    %c0_14 = arith.constant 0 : index
    %15 = vector.load %arg8[%c0_13, %c0_14] : memref<8x384xf32, #tpu.memory_space<vmem>>, vector<8x384xf32>
    tpu.vector_store %arg8[%c0_13, %c0_14], %14 {strides = array<i32>} : memref<8x384xf32, #tpu.memory_space<vmem>>, vector<8x384xf32>,
    return
  }
  func.func @transform_0(%arg0: i32) -> (i32, i32) {
    %c0_i32 = arith.constant 0 : i32
    %c0_i32_0 = arith.constant 0 : i32
    return %arg0, %c0_i32 : i32, i32
  }
  func.func @transform_1(%arg0: i32) -> (i32, i32) {
    %c0_i32 = arith.constant 0 : i32
    %c0_i32_0 = arith.constant 0 : i32
    %c0_i32_1 = arith.constant 0 : i32
    return %c0_i32, %c0_i32_0 : i32, i32
  }
  func.func @transform_2(%arg0: i32) -> (i32, i32) {
    %c0_i32 = arith.constant 0 : i32
    %c0_i32_0 = arith.constant 0 : i32
    %c0_i32_1 = arith.constant 0 : i32
    return %c0_i32, %c0_i32_0 : i32, i32
  }
  func.func @transform_3(%arg0: i32) -> (i32, i32) {
    %c0_i32 = arith.constant 0 : i32
    %c0_i32_0 = arith.constant 0 : i32
    return %arg0, %c0_i32 : i32, i32
  }
  func.func @transform_4(%arg0: i32) -> (i32, i32) {
    %c0_i32 = arith.constant 0 : i32
    %c0_i32_0 = arith.constant 0 : i32
    %c0_i32_1 = arith.constant 0 : i32
    return %c0_i32, %c0_i32_0 : i32, i32
  }
  func.func @transform_5(%arg0: i32) -> (i32, i32) {
    %c0_i32 = arith.constant 0 : i32
    %c0_i32_0 = arith.constant 0 : i32
    %c0_i32_1 = arith.constant 0 : i32
    return %c0_i32, %c0_i32_0 : i32, i32
  }
  func.func @transform_6(%arg0: i32) -> (i32, i32) {
    %c0_i32 = arith.constant 0 : i32
    %c0_i32_0 = arith.constant 0 : i32
    return %arg0, %c0_i32 : i32, i32
  }
  func.func @transform_7(%arg0: i32) -> (i32, i32) {
    %c0_i32 = arith.constant 0 : i32
    %c0_i32_0 = arith.constant 0 : i32
    return %arg0, %c0_i32 : i32, i32
  }
}

</mosaic_0001>

<bundles_post_ra>
// kernel: graph_scale_apply.1
= control target key start
LH: loop header
LB: loop body
LE: loop exit
PB: predicated region body
PF: predicated region fallthrough
CT: control target
= control target key end

     0   :  { %v48_v0 = vlaneseq  ;;  %s175_s0 = inlined_call_operand.vmem [shape: f32[8,128], index: 0, kind: input, shape index: {}]   ;;  %s176_s1 = inlined_call_operand.vmem [shape: f32[1,128], index: 1, kind: input, shape index: {}]   ;;  %s177_s2 = inlined_call_operand.vmem [shape: f32[1,128], index: 2, kind: input, shape index: {}]   ;;  %s178_s4 = inlined_call_operand.vmem [shape: f32[1,384], index: 4, kind: input, shape index: {}]   ;;  %s179_s5 = inlined_call_operand.vmem [shape: f32[1,384], index: 5, kind: input, shape index: {}]   ;;  %s180_s3 = inlined_call_operand.vmem [shape: f32[8,384], index: 3, kind: input, shape index: {}]   ;;  %s181_s6 = inlined_call_operand.vmem [shape: f32[8,128], index: 6, kind: output, shape index: {0}]   ;;  %s182_s7 = inlined_call_operand.vmem [shape: f32[8,384], index: 7, kind: output, shape index: {1}]  }
   0x1   :  { %v25_v1 = vld [vmem:[%s175_s0] sm:$0xff]  ;;  %v44_v13 = vld [vmem:[%s180_s3 + $0x8] sm:$0xff]  ;;  %v45_v18 = vld [vmem:[%s180_s3 + $0x10] sm:$0xff] }
   0x2   :  { %v97_v2 = vld [vmem:[%s176_s1] ss:$0 sm:$0xff]  ;;  %v49_v5 = vshrl.u32 %v48_v0, 7 }
   0x3   :  { %v98_v3 = vld [vmem:[%s177_s2] ss:$0 sm:$0xff]  ;;  %v33_v4 = vsub.f32 %v25_v1, %v97_v2 }
   0x4   :  { %v46_v6 = vld [vmem:[%s178_s4] sm:$0x7]  ;;  %v50_v9 = vsub.s32 0, %v49_v5  ;;  %v54_v10 = vsub.s32 1, %v49_v5  ;;  %v58_v11 = vsub.s32 2, %v49_v5 }
   0x5   :  { %v66_v7 = vld [vmem:[%s179_s5] sm:$0x7]  ;;  %v41_v8 = vmul.f32 %v98_v3, %v33_v4 }
   0x6   :  { %v43_v12 = vld [vmem:[%s180_s3] sm:$0xff]  ;;  %v51_v14 = vrot.slane %v46_v6, %v50_v9  ;;  %v71_v15 = vrot.slane %v66_v7, %v50_v9  ;;  %v55_v16 = vrot.slane %v46_v6, %v54_v10  ;;  %v75_v17 = vrot.slane %v66_v7, %v54_v10 }
   0x7   :  { %42 = vst [vmem:[%s181_s6] sm:$0xff] %v41_v8  ;;  %v59_v19 = vrot.slane %v46_v6, %v58_v11  ;;  %v79_v20 = vrot.slane %v66_v7, %v58_v11 }
   0x8   :  { %v63_v21 = vsub.f32 %v43_v12, %v51_v14  ;;  %v64_v22 = vsub.f32 %v44_v13, %v55_v16 }
   0x9   :  { %v65_v23 = vsub.f32 %v45_v18, %v59_v19 }
   0xa   :  { %v83_v24 = vmul.f32 %v71_v15, %v63_v21  ;;  %v84_v25 = vmul.f32 %v75_v17, %v64_v22 }
   0xb   :  { %v85_v26 = vmul.f32 %v79_v20, %v65_v23 }
   0xc   :  { %86 = vst [vmem:[%s182_s7] sm:$0xff] %v83_v24  ;;  %87 = vst [vmem:[%s182_s7 + $0x8] sm:$0xff] %v84_v25 }
   0xd   :  { %88 = vst [vmem:[%s182_s7 + $0x10] sm:$0xff] %v85_v26 }

</bundles_post_ra>
